<compile_context>
chip_gen: v6e
topology: v6e:2x2x1
jax: 0.10.0
libtpu: 0.0.40
codegen_flags: <defaults>
</compile_context>

<pallas_src>
import functools
import math

import jax
import jax.numpy as jnp
from jax import lax
from jax.experimental import pallas as pl
from jax.experimental.pallas import tpu as pltpu

_LANE = 128
_MAX_SLAB_LANES = 16384  # above this, lcm(C,128) lane width is not worth it


def _focal_partial_kernel(preds_ref, labels_ref, out_ref, *,
                          gamma, rows, tile_rows, needs_mask):
    eps = 1e-07
    p = preds_ref[...].astype(jnp.float32)      # (tile_rows, lanes) widen in-kernel
    lab = labels_ref[...].astype(jnp.float32)

    if needs_mask:
        # Ragged row tail of the last grid step: boundary-block rows hold
        # garbage.  Mask BEFORE the log so NaN/Inf can't survive the *0.
        row0 = pl.program_id(0) * tile_rows
        rid = row0 + lax.broadcasted_iota(jnp.int32, p.shape, 0)
        valid = rid < rows
        p = jnp.where(valid, p, 1.0)
        lab = jnp.where(valid, lab, 0.0)

    ce = (-jnp.log(p + eps) + eps) * lab
    # gamma stays static -> integer_pow lowers to VPU multiplies for int gamma.
    fl = ((1.0 - p) ** gamma) * ce

    # Sublane-only reduction; lane axis stays dense for an unmasked store.
    # Class weight is applied AFTER this reduction, in the wrapper.
    out_ref[0] = jnp.sum(fl, axis=0, keepdims=True)   # (1, lanes)


def focal_loss_pallas(preds, labels, weight, gamma=2, *, tile_budget_bytes=4 << 20):
    """preds, labels: [N, C] (any float dtype); weight: [C]. Returns scalar f32."""
    n, c = preds.shape
    assert labels.shape == (n, c)

    lanes_slab = (_LANE * c) // math.gcd(_LANE, c)      # lcm(C, 128)
    use_slab = lanes_slab <= _MAX_SLAB_LANES

    if use_slab:
        # Lane-dense flattening: [N, C] -> [rows, lanes] (free bitcast reshape
        # whenever N*C is a multiple of lanes; otherwise pad by < lanes zeros).
        lanes = lanes_slab
        total = n * c
        rows = pl.cdiv(total, lanes)
        phys_total = rows * lanes

        def to_slab(x):
            flat = x.reshape(-1)
            if phys_total != total:
                flat = jnp.pad(flat, (0, phys_total - total))  # zero labels => 0 contribution
            return flat.reshape(rows, lanes)

        preds_s, labels_s = to_slab(preds), to_slab(labels)
        # Fixed per-row lane->class mapping: class = lane % C.
        w_pattern = jnp.tile(weight.astype(jnp.float32).reshape(-1), lanes // c)
    else:
        # Awkward / large class counts: natural [N, C] layout, full-C blocks.
        rows, lanes = n, c
        preds_s, labels_s = preds, labels
        w_pattern = weight.astype(jnp.float32).reshape(-1)

    # --- dtype-aware tile sizing -------------------------------------------
    itemsize = max(preds_s.dtype.itemsize, labels_s.dtype.itemsize)
    align = max(8, 32 // itemsize)                       # 8 f32 / 16 bf16 / 32 int8

    max_rows = tile_budget_bytes // (lanes * itemsize)
    max_rows = max(align, (max_rows // align) * align)

    if rows > max_rows:
        tile_rows = max_rows
    elif rows >= 2 * align and rows * lanes * itemsize > (2 << 20):
        # Mid-size problem that would fit one tile: keep >= 2 grid steps so
        # v7x's two TensorCores both get work (no-op on v5e/v6e).
        tile_rows = pl.cdiv(pl.cdiv(rows, 2), align) * align
    else:
        tile_rows = rows                                 # full-dim block (any size OK)

    num_tiles = pl.cdiv(rows, tile_rows)
    needs_mask = (num_tiles * tile_rows) != rows

    kernel = functools.partial(_focal_partial_kernel, gamma=gamma, rows=rows,
                               tile_rows=tile_rows, needs_mask=needs_mask)

    tile_in_bytes = tile_rows * lanes * (preds_s.dtype.itemsize + labels_s.dtype.itemsize)
    vmem_limit = int(min(32 << 20, max(16 << 20, 2 * tile_in_bytes + (4 << 20))))

    elems = num_tiles * tile_rows * lanes
    cost = pl.CostEstimate(
        flops=8 * elems,
        transcendentals=elems,
        bytes_accessed=rows * lanes * (preds_s.dtype.itemsize + labels_s.dtype.itemsize)
        + 4 * num_tiles * lanes,
    )

    partials = pl.pallas_call(
        kernel,
        out_shape=jax.ShapeDtypeStruct((num_tiles, 1, lanes), jnp.float32),
        grid=(num_tiles,),
        in_specs=[
            pl.BlockSpec((tile_rows, lanes), lambda i: (i, 0)),
            pl.BlockSpec((tile_rows, lanes), lambda i: (i, 0)),
        ],
        out_specs=pl.BlockSpec((1, 1, lanes), lambda i: (i, 0, 0)),
        compiler_params=pltpu.CompilerParams(
            dimension_semantics=("parallel",),
            vmem_limit_bytes=vmem_limit,
        ),
        cost_estimate=cost,
    )(preds_s, labels_s)

    # Tiny epilogue: per-lane class weight + final mean over the batch.
    per_lane = jnp.sum(partials, axis=(0, 1))            # (lanes,)
    return jnp.sum(per_lane * w_pattern) / jnp.float32(n)


def focal_loss_ref(preds, labels, weight, gamma=2):
    eps = 1e-07
    p = preds.astype(jnp.float32)
    lab = labels.astype(jnp.float32)
    ce = (-1.0 * jnp.log(p + eps) + eps) * lab
    fl = (1.0 - p) ** gamma * ce
    fl = fl * weight.astype(jnp.float32).reshape(1, -1)
    return jnp.mean(jnp.sum(fl, axis=1))


if __name__ == "__main__":
    key = jax.random.PRNGKey(0)

    def make_inputs(k, n, c):
        k1, k2 = jax.random.split(k)
        logits = jax.random.normal(k1, (n, c), dtype=jnp.float32)
        preds = jax.nn.softmax(logits, axis=1)            # probability-like outputs
        label_idx = jax.random.randint(k2, (n,), 0, c)
        labels = jax.nn.one_hot(label_idx, c, dtype=jnp.float32)
        weight = jnp.full((c,), 1.0 / c, dtype=jnp.float32)  # __init__ default weights
        return preds, labels, weight

    # Case 1: module defaults (gamma=2, labelnum=2), lane-dense slab, no pad/mask.
    p, l, w = make_inputs(key, 256, 2)
    out = jax.block_until_ready(focal_loss_pallas(p, l, w, gamma=2))
    ref = focal_loss_ref(p, l, w, gamma=2)
    assert jnp.allclose(out, ref, rtol=1e-5, atol=1e-6), (out, ref)

    # Case 2: multi-tile + ragged row tail (tiny forced tile) -> in-kernel mask path.
    p, l, w = make_inputs(jax.random.fold_in(key, 1), 1280, 2)
    out = jax.block_until_ready(
        focal_loss_pallas(p, l, w, gamma=2, tile_budget_bytes=8 * 128 * 4))
    ref = focal_loss_ref(p, l, w, gamma=2)
    assert jnp.allclose(out, ref, rtol=1e-5, atol=1e-6), (out, ref)

    # Case 3: awkward class count (lcm(C,128) huge) -> natural-layout fallback path.
    p, l, w = make_inputs(jax.random.fold_in(key, 2), 20, 1001)
    out = jax.block_until_ready(
        focal_loss_pallas(p, l, w, gamma=2, tile_budget_bytes=8 * 1001 * 4))
    ref = focal_loss_ref(p, l, w, gamma=2)
    assert jnp.allclose(out, ref, rtol=1e-5, atol=1e-6), (out, ref)

    print("KERNEL_OK")
</pallas_src>

<mosaic_0001>
module attributes {stable_mosaic.version = 11 : i64} {
  func.func @_focal_partial_kernel(%arg0: i32, %arg1: memref<4x128xf32, #tpu.memory_space<vmem>>, %arg2: memref<4x128xf32, #tpu.memory_space<vmem>>, %arg3: memref<1x1x128xf32, #tpu.memory_space<vmem>>) attributes {dimension_semantics = [#tpu.dimension_semantics<parallel>], iteration_bounds = array<i64: 1>, scalar_prefetch = 0 : i64, scratch_operands = 0 : i64, tpu.core_type = #tpu.core_type<tc>, window_params = [{transform_indices = @transform_0, window_bounds = array<i64: 4, 128>}, {transform_indices = @transform_1, window_bounds = array<i64: 4, 128>}, {transform_indices = @transform_2, window_bounds = array<i64: 1, 1, 128>}]} {
    %c0 = arith.constant 0 : index
    %c0_0 = arith.constant 0 : index
    %0 = vector.load %arg1[%c0, %c0_0] : memref<4x128xf32, #tpu.memory_space<vmem>>, vector<4x128xf32>
    %c0_1 = arith.constant 0 : index
    %c0_2 = arith.constant 0 : index
    %1 = vector.load %arg2[%c0_1, %c0_2] : memref<4x128xf32, #tpu.memory_space<vmem>>, vector<4x128xf32>
    %cst = arith.constant 1.000000e-07 : f32
    %2 = vector.broadcast %cst : f32 to vector<4x128xf32>
    %3 = arith.addf %0, %2 : vector<4x128xf32>
    %4 = math.log %3 : vector<4x128xf32>
    %cst_3 = arith.constant 0.000000e+00 : f32
    %5 = vector.broadcast %cst_3 : f32 to vector<4x128xf32>
    %6 = arith.subf %5, %4 : vector<4x128xf32>
    %cst_4 = arith.constant 1.000000e-07 : f32
    %7 = vector.broadcast %cst_4 : f32 to vector<4x128xf32>
    %8 = arith.addf %6, %7 : vector<4x128xf32>
    %9 = arith.mulf %8, %1 : vector<4x128xf32>
    %cst_5 = arith.constant 1.000000e+00 : f32
    %10 = vector.broadcast %cst_5 : f32 to vector<4x128xf32>
    %11 = arith.subf %10, %0 : vector<4x128xf32>
    %12 = arith.mulf %11, %11 : vector<4x128xf32>
    %13 = arith.mulf %12, %9 : vector<4x128xf32>
    %cst_6 = arith.constant dense<0.000000e+00> : vector<128xf32>
    %14 = vector.multi_reduction <add>, %13, %cst_6 [0] : vector<4x128xf32> to vector<128xf32>
    %15 = vector.shape_cast %14 : vector<128xf32> to vector<1x128xf32>
    %c0_7 = arith.constant 0 : index
    %c0_8 = arith.constant 0 : index
    %c0_9 = arith.constant 0 : index
    %16 = vector.load %arg3[%c0_7, %c0_8, %c0_9] : memref<1x1x128xf32, #tpu.memory_space<vmem>>, vector<1x1x128xf32>
    %17 = vector.shape_cast %16 : vector<1x1x128xf32> to vector<1x128xf32>
    %18 = vector.shape_cast %15 : vector<1x128xf32> to vector<1x1x128xf32>
    tpu.vector_store %arg3[%c0_7, %c0_8, %c0_9], %18 {strides = array<i32>} : memref<1x1x128xf32, #tpu.memory_space<vmem>>, vector<1x1x128xf32>,
    return
  }
  func.func @transform_0(%arg0: i32) -> (i32, i32) {
    %c0_i32 = arith.constant 0 : i32
    %c0_i32_0 = arith.constant 0 : i32
    return %arg0, %c0_i32 : i32, i32
  }
  func.func @transform_1(%arg0: i32) -> (i32, i32) {
    %c0_i32 = arith.constant 0 : i32
    %c0_i32_0 = arith.constant 0 : i32
    return %arg0, %c0_i32 : i32, i32
  }
  func.func @transform_2(%arg0: i32) -> (i32, i32, i32) {
    %c0_i32 = arith.constant 0 : i32
    %c0_i32_0 = arith.constant 0 : i32
    %c0_i32_1 = arith.constant 0 : i32
    return %arg0, %c0_i32, %c0_i32_0 : i32, i32, i32
  }
}

</mosaic_0001>

<bundles_post_ra>
// kernel: tpu_custom_call.1
= control target key start
LH: loop header
LB: loop body
LE: loop exit
PB: predicated region body
PF: predicated region fallthrough
CT: control target
= control target key end

     0   :  { %7 = vsyncpa [#allocation3], 0  ;;  %s170_s0 = inlined_call_operand.hbm [shape: f32[4,128], index: 0, kind: input, shape index: {}]   ;;  %s171_s1 = inlined_call_operand.hbm [shape: f32[4,128], index: 1, kind: input, shape index: {}]   ;;  %s172_s2 = inlined_call_operand.hbm [shape: f32[1,1,128], index: 2, kind: output, shape index: {}]  }
   0x1   :  { %8 = vsyncpa [#allocation6], 0 }
   0x2   :  { %9 = vsyncpa [#allocation4], 0  ;;  %s143_s9 = smov [#allocation2]   ;;  %s144_s11 = smov [#allocation5]  }
   0x3   :  { %s16_s10 = sshll.u32 %s143_s9, 4  ;;  %s26_s12 = sshll.u32 %s144_s11, 4  ;;  %s17_s10 = int_to_ptr.vmem [resolvable:$true] %s16_s10  ;;  %s27_s12 = int_to_ptr.vmem [resolvable:$true] %s26_s12 }
   0x4   :  { %s85_s13 = scalar_lea.vmem %s17_s10, 64  ;;  %p90_p1 = scmp.lt.s32.totalorder %s17_s10, %s17_s10 }
   0x5   :  { %p86_p0 = scmp.ne.s32.totalorder %s17_s10, %s85_s13  ;;  %p91_p2 = scmp.lt.s32.totalorder %s85_s13, %s85_s13 }
   0x7   :  { %p92_p3 = por %p91_p2, %p90_p1 }
   0x9   :  { %p93_p4 = pnand %p92_p3, %p86_p0 }
   0xb   :  { %96 = shalt.err (!%p93_p4)
}
   0xc   :  { %19 = dma.hbm_to_vmem [thread:$0]  %s170_s0, 64, %s17_s10, [#allocation3]  }
   0xd   :  { %s105_s16 = scalar_lea.vmem %s27_s12, 64  ;;  %p110_p6 = scmp.lt.s32.totalorder %s27_s12, %s27_s12 }
   0xe   :  { %p106_p5 = scmp.ne.s32.totalorder %s27_s12, %s105_s16  ;;  %p111_p7 = scmp.lt.s32.totalorder %s105_s16, %s105_s16 }
  0x10   :  { %p112_p8 = por %p111_p7, %p110_p6 }
  0x12   :  { %p113_p9 = pnand %p112_p8, %p106_p5 }
  0x14   :  { %116 = shalt.err (!%p113_p9)
}
  0x15   :  { %29 = dma.hbm_to_vmem [thread:$0]  %s171_s1, 64, %s27_s12, [#allocation6]  }
  0x16   :  { %137 = dma.done.wait [#allocation3], 64  }
  0x17   :  { %138 = vsyncadd [#allocation3], 4294967232 }
  0x18   :  { %139 = dma.done.wait [#allocation6], 64  }
  0x19   :  { %140 = vsyncadd [#allocation6], 4294967232  ;;  %v36_v0 = vld [vmem:[#allocation2] sm:$0xf]  ;;  %v37_v6 = vld [vmem:[#allocation5] sm:$0xf] }
  0x1a   :  { %v38_v1 = vadd.f32 1e-07, %v36_v0  ;;  %v44_v4 = vsub.f32 1.0, %v36_v0  ;;  %vm47_vm0 = vcmask 1043456   ;;  %s145_s0 = smov [#allocation7]  }
  0x1b   :  { %s62_s1 = sshll.u32 %s145_s0, 4  ;;  %s63_s1 = int_to_ptr.vmem [resolvable:$true] %s62_s1 }
  0x1c   :  { %75 = vlog2.f32 %v38_v1  ;;  %v45_v8 = vmul.f32 %v44_v4, %v44_v4  ;;  %s117_s19 = scalar_lea.vmem %s63_s1, 16  ;;  %s121_s20 = scalar_lea.vmem %s63_s1, 32 }
  0x1d   :  { %p118_p10 = scmp.ne.s32.totalorder %s63_s1, %s117_s19  ;;  %p122_p11 = scmp.lt.s32.totalorder %s63_s1, %s63_s1 }
  0x1e   :  { %p123_p12 = scmp.lt.s32.totalorder %s121_s20, %s117_s19 }
  0x20   :  { %p124_p13 = por %p123_p12, %p122_p11 }
  0x22   :  { %p125_p0 = pnand %p124_p13, %p118_p10 }
  0x29   :  { %v76_v2 = vpop.eup %75 }
  0x2a   :  { %v40_v3 = vmul.f32 0.6931472, %v76_v2 }
  0x2c   :  { %v41_v5 = vsub.f32 0.0, %v40_v3 }
  0x2e   :  { %v42_v7 = vadd.f32 1e-07, %v41_v5 }
  0x30   :  { %v43_v9 = vmul.f32 %v42_v7, %v37_v6 }
  0x32   :  { %v46_v10 = vmul.f32 %v45_v8, %v43_v9 }
  0x34   :  { %v48_v11 = vsel %vm47_vm0, %v46_v10, 0.0 }
  0x35   :  { %v49_v12 = vrot.slane %v48_v11, 4 }
  0x37   :  { %v50_v13 = vadd.f32 %v49_v12, %v48_v11 }
  0x39   :  { %v51_v14 = vrot.slane %v50_v13, 2 }
  0x3b   :  { %v52_v15 = vadd.f32 %v51_v14, %v50_v13 }
  0x3d   :  { %v53_v16 = vrot.slane %v52_v15, 1 }
  0x3f   :  { %v54_v17 = vadd.f32 %v53_v16, %v52_v15 }
  0x41   :  { %55 = vst [vmem:[#allocation7] sm:$0x1] %v54_v17 }
  0x42   :  { %128 = shalt.err (!%p125_p0)
}
  0x43   :  { %65 = dma.vmem_to_hbm [thread:$0]  %s63_s1, 16, %s172_s2, [#allocation4]  }
  0x44   :  { %141 = dma.done.wait [#allocation4], 16  }
  0x45   :  { %142 = vsyncadd [#allocation4], 4294967280 }
  0x46   :  { %69 = vsyncpa [#allocation3], 1 }
  0x47   :  { %70 = vsyncpa [#allocation6], 1 }
  0x48   :  { %71 = vsyncpa [#allocation4], 1 }

</bundles_post_ra>
